<compile_context>
chip_gen: v7x
topology: tpu7x:2x2x1
jax: 0.10.0
libtpu: 0.0.40
codegen_flags: <defaults>
</compile_context>

<pallas_src>
import jax
import jax.numpy as jnp
from jax.experimental import pallas as pl
from jax.experimental.pallas import tpu as pltpu


def _ffn_kernel(x_ref, w1y_ref, w1g_ref, w2_ref, o_ref, acc_ref):
    # x_ref   : (TM, D)   token row tile (resident across the F axis)
    # w1y_ref : (D, TF)   fc1 "linear" half tile
    # w1g_ref : (D, TF)   fc1 "gate"   half tile
    # w2_ref  : (TF, D)   fc2 weight tile
    # o_ref   : (TM, D)   output row tile
    # acc_ref : (TM, D)   f32 accumulator, resident across the F grid axis
    @pl.when(pl.program_id(1) == 0)
    def _():
        acc_ref[...] = jnp.zeros_like(acc_ref)

    x = x_ref[...]
    hy = jnp.dot(x, w1y_ref[...], preferred_element_type=jnp.float32)
    hg = jnp.dot(x, w1g_ref[...], preferred_element_type=jnp.float32)
    # Elementwise gate math in f32; sigmoid goes to the EUP.
    act = hy * (hg * jax.nn.sigmoid(hg))              # y * silu(gate)
    acc_ref[...] += jnp.dot(act.astype(w2_ref.dtype), w2_ref[...],
                            preferred_element_type=jnp.float32)

    @pl.when(pl.program_id(1) == pl.num_programs(1) - 1)
    def _():
        o_ref[...] = acc_ref[...].astype(o_ref.dtype)


def _pick_tile(total, preferred, quantum):
    """Largest tile <= min(preferred, total) that divides `total` and is a
    multiple of `quantum`; falls back to the full extent for ragged sizes."""
    if total <= quantum:
        return total
    preferred = min(preferred, total)
    t = max(quantum, (preferred // quantum) * quantum)
    while t >= quantum and total % t:
        t -= quantum
    if t < quantum or total % t:
        # TODO(synk): pad ragged M/F instead of collapsing to a full-extent tile.
        return total
    return t


def _vmem_needed(tm, tf, D, in_isz, out_isz):
    """Per-step VMEM footprint: double-buffered tiles + f32 accumulator +
    in-kernel (tm, tf) f32 intermediates (hy, hg, act, cast of act)."""
    return (2 * tm * D * in_isz            # x tiles
            + 2 * 2 * D * tf * in_isz      # w1 linear + gate tiles
            + 2 * tf * D * in_isz          # w2 tiles
            + 2 * tm * D * out_isz         # output tiles
            + tm * D * 4                   # f32 accumulator
            + 4 * tm * tf * 4)             # hy, hg, act (+ cast) temporaries


def _tpu_vmem_capacity_bytes():
    try:
        info = pltpu.get_tpu_info()
        cap = getattr(info, "vmem_capacity_bytes", None)
        if cap:
            return int(cap)
    except Exception:
        pass
    return 64 << 20  # conservative (v7x-sized) fallback


def feed_forward(x, w1, w2, *, tm=None, tf=None):
    """x: (B, S, D); w1: (D, 2F); w2: (F, D). Returns (B, S, D)."""
    B, S, D = x.shape
    F = w2.shape[0]
    assert w1.shape == (D, 2 * F)
    M = B * S

    in_isz = jnp.dtype(w1.dtype).itemsize
    out_isz = jnp.dtype(x.dtype).itemsize

    vmem_cap = _tpu_vmem_capacity_bytes()
    big_vmem = vmem_cap >= (100 << 20)       # v5e/v6e (128 MiB) vs v7x (64 MiB)
    vmem_cap_limit = int(vmem_cap * 0.85)

    # Generation-aware defaults: v6e wants tm >= ~576 to be MXU-bound,
    # v7x (3.2 TB/s HBM, 64 MiB VMEM) prefers smaller tiles.
    if tm is None:
        tm = 768 if big_vmem else 512
    if tf is None:
        tf = 1024 if big_vmem else 512

    # Dtype-aware sublane quantum for the row tile (8 f32 / 16 bf16 / 32 i8).
    q_m = max(8, 32 // jnp.dtype(x.dtype).itemsize)
    q_f = 256 if F % 256 == 0 else 128       # lane quantum for the hidden tile

    tm = _pick_tile(M, tm, q_m)
    tf = _pick_tile(F, tf, q_f)

    # Give the "parallel" M axis >= 2 tiles when possible (v7x 2-TC sharding).
    if tm == M and M >= 2 * q_m and M % 2 == 0 and (M // 2) % q_m == 0:
        tm = M // 2

    # Shrink tiles until the footprint (plus headroom) fits the VMEM budget.
    headroom = 4 << 20
    while _vmem_needed(tm, tf, D, in_isz, out_isz) + headroom > vmem_cap_limit:
        if tf > q_f and tf % 2 == 0 and (tf // 2) % q_f == 0 and F % (tf // 2) == 0:
            tf //= 2
        elif tm > q_m and tm % 2 == 0 and (tm // 2) % q_m == 0 and M % (tm // 2) == 0:
            tm //= 2
        else:
            break
    assert M % tm == 0 and F % tf == 0

    x2 = x.reshape(M, D)

    # Fast path: w1 stays whole in HBM; two BlockSpecs (same operand passed
    # twice) address the linear / gate halves by lane-aligned block offset.
    # Fallback (tiny F, tf not a multiple of 128): pre-split — copy is trivial.
    gate_block_off = F // tf
    if tf % 128 == 0:
        w1_lin_operand = w1
        w1_gate_operand = w1
        w1y_spec = pl.BlockSpec((D, tf), lambda i, j: (0, j))
        w1g_spec = pl.BlockSpec((D, tf),
                                lambda i, j, _o=gate_block_off: (0, j + _o))
    else:
        w1_lin_operand = w1[:, :F]
        w1_gate_operand = w1[:, F:]
        w1y_spec = pl.BlockSpec((D, tf), lambda i, j: (0, j))
        w1g_spec = pl.BlockSpec((D, tf), lambda i, j: (0, j))

    needed = _vmem_needed(tm, tf, D, in_isz, out_isz)
    vmem_limit = int(min(max(needed + (8 << 20), 32 << 20), vmem_cap_limit))

    m_tiles = M // tm
    cost = pl.CostEstimate(
        flops=6 * M * D * F,                 # 2*M*D*2F (fc1) + 2*M*F*D (fc2)
        transcendentals=M * F,               # sigmoid
        bytes_accessed=(M * D * in_isz                       # x (read once/tile)
                        + 3 * D * F * in_isz * m_tiles       # weights re-streamed
                        + M * D * out_isz),                  # output
    )

    out = pl.pallas_call(
        _ffn_kernel,
        out_shape=jax.ShapeDtypeStruct((M, D), x.dtype),
        grid_spec=pltpu.PrefetchScalarGridSpec(
            num_scalar_prefetch=0,
            grid=(M // tm, F // tf),
            in_specs=[
                pl.BlockSpec((tm, D), lambda i, j: (i, 0)),   # x row tile
                w1y_spec,                                     # fc1 linear half
                w1g_spec,                                     # fc1 gate half
                pl.BlockSpec((tf, D), lambda i, j: (j, 0)),   # w2 tile
            ],
            out_specs=pl.BlockSpec((tm, D), lambda i, j: (i, 0)),
            scratch_shapes=[pltpu.VMEM((tm, D), jnp.float32)],
        ),
        compiler_params=pltpu.CompilerParams(
            dimension_semantics=("parallel", "arbitrary"),
            vmem_limit_bytes=vmem_limit,
        ),
        cost_estimate=cost,
    )(x2, w1_lin_operand, w1_gate_operand, w2)
    return out.reshape(B, S, D)


def feed_forward_ref(x, w1, w2):
    h = jnp.einsum("bsd,df->bsf", x.astype(jnp.float32), w1.astype(jnp.float32))
    f = w2.shape[0]
    y, gate = h[..., :f], h[..., f:]
    return jnp.einsum("bsf,fd->bsd", y * jax.nn.silu(gate),
                      w2.astype(jnp.float32))


if __name__ == "__main__":
    # Small config: d_model=32, attn_mlp_d_intermediate=64, batch=2, seq=8
    B, S, D, Fdim = 2, 8, 32, 64
    key = jax.random.PRNGKey(0)
    kx, k1, k2 = jax.random.split(key, 3)

    x = jax.random.normal(kx, (B, S, D), dtype=jnp.float32)
    # PyTorch Linear weights would be (2F, D) and (D, F); we store transposes.
    w1 = (jax.random.normal(k1, (D, 2 * Fdim), dtype=jnp.float32)
          / jnp.sqrt(D).astype(jnp.float32))
    w2 = (jax.random.normal(k2, (Fdim, D), dtype=jnp.float32)
          / jnp.sqrt(Fdim).astype(jnp.float32))

    ref = feed_forward_ref(x, w1, w2)

    # f32 run: tight check vs reference.
    out = jax.block_until_ready(feed_forward(x, w1, w2))
    assert out.shape == (B, S, D)
    assert jnp.allclose(out, ref, atol=1e-4, rtol=1e-4), "f32 mismatch vs reference"

    # bf16 run (preferred production dtype: half the HBM weight traffic and
    # full MXU rate on v5e/v6e); f32 accumulate inside the kernel.
    out_bf16 = jax.block_until_ready(
        feed_forward(x.astype(jnp.bfloat16),
                     w1.astype(jnp.bfloat16),
                     w2.astype(jnp.bfloat16)))
    assert out_bf16.shape == (B, S, D)
    assert jnp.allclose(out_bf16.astype(jnp.float32), ref, atol=2e-1, rtol=2e-1), \
        "bf16 mismatch vs reference"

    # A lane-aligned-F config exercising the no-slice fast path (w1 passed
    # whole, halves addressed purely via BlockSpec index_maps).
    D2, F2 = 128, 256
    x_b = jax.random.normal(kx, (2, 64, D2), dtype=jnp.bfloat16)
    w1_b = (jax.random.normal(k1, (D2, 2 * F2), dtype=jnp.bfloat16)
            / jnp.sqrt(D2).astype(jnp.bfloat16))
    w2_b = (jax.random.normal(k2, (F2, D2), dtype=jnp.bfloat16)
            / jnp.sqrt(F2).astype(jnp.bfloat16))
    ref_b = feed_forward_ref(x_b, w1_b, w2_b)
    out_b = jax.block_until_ready(feed_forward(x_b, w1_b, w2_b))
    assert out_b.shape == x_b.shape
    assert jnp.allclose(out_b.astype(jnp.float32), ref_b, atol=5e-1, rtol=5e-2), \
        "bf16 fast-path mismatch vs reference"

    print("KERNEL_OK")
</pallas_src>

<mosaic_0001>
module attributes {stable_mosaic.version = 11 : i64} {
  func.func @_ffn_kernel(%arg0: i32, %arg1: i32, %arg2: memref<8x32xf32, #tpu.memory_space<vmem>>, %arg3: memref<32x64xf32, #tpu.memory_space<vmem>>, %arg4: memref<32x64xf32, #tpu.memory_space<vmem>>, %arg5: memref<64x32xf32, #tpu.memory_space<vmem>>, %arg6: memref<8x32xf32, #tpu.memory_space<vmem>>, %arg7: memref<8x32xf32, #tpu.memory_space<vmem>>) attributes {dimension_semantics = [#tpu.dimension_semantics<parallel>, #tpu.dimension_semantics<arbitrary>], iteration_bounds = array<i64: 2, 1>, scalar_prefetch = 0 : i64, scratch_operands = 1 : i64, tpu.core_type = #tpu.core_type<tc>, window_params = [{transform_indices = @transform_0, window_bounds = array<i64: 8, 32>}, {transform_indices = @transform_1, window_bounds = array<i64: 32, 64>}, {transform_indices = @transform_2, window_bounds = array<i64: 32, 64>}, {transform_indices = @transform_3, window_bounds = array<i64: 64, 32>}, {transform_indices = @transform_4, window_bounds = array<i64: 8, 32>}]} {
    %c0_i32 = arith.constant 0 : i32
    %0 = arith.cmpi eq, %arg1, %c0_i32 : i32
    %1 = arith.extui %0 : i1 to i32
    %c0_i32_0 = arith.constant 0 : i32
    %2 = arith.cmpi ne, %1, %c0_i32_0 : i32
    scf.if %2 {
      %cst_17 = arith.constant 0.000000e+00 : f32
      %23 = vector.broadcast %cst_17 : f32 to vector<8x32xf32>
      %c0_18 = arith.constant 0 : index
      %c0_19 = arith.constant 0 : index
      %24 = vector.load %arg7[%c0_18, %c0_19] : memref<8x32xf32, #tpu.memory_space<vmem>>, vector<8x32xf32>
      tpu.vector_store %arg7[%c0_18, %c0_19], %23 {strides = array<i32>} : memref<8x32xf32, #tpu.memory_space<vmem>>, vector<8x32xf32>,
    } else {
    }
    %c0 = arith.constant 0 : index
    %c0_1 = arith.constant 0 : index
    %3 = vector.load %arg2[%c0, %c0_1] : memref<8x32xf32, #tpu.memory_space<vmem>>, vector<8x32xf32>
    %c0_2 = arith.constant 0 : index
    %c0_3 = arith.constant 0 : index
    %4 = vector.load %arg3[%c0_2, %c0_3] : memref<32x64xf32, #tpu.memory_space<vmem>>, vector<32x64xf32>
    %cst = arith.constant dense<0.000000e+00> : vector<8x64xf32>
    %5 = tpu.matmul %3, %4, %cst {dimension_numbers = #tpu.dot_dimension_numbers<[1], [0], [0], [1], [0, 0, 1, 1], [], []>} : vector<8x32xf32>, vector<32x64xf32>, vector<8x64xf32> -> vector<8x64xf32>
    %c0_4 = arith.constant 0 : index
    %c0_5 = arith.constant 0 : index
    %6 = vector.load %arg4[%c0_4, %c0_5] : memref<32x64xf32, #tpu.memory_space<vmem>>, vector<32x64xf32>
    %cst_6 = arith.constant dense<0.000000e+00> : vector<8x64xf32>
    %7 = tpu.matmul %3, %6, %cst_6 {dimension_numbers = #tpu.dot_dimension_numbers<[1], [0], [0], [1], [0, 0, 1, 1], [], []>} : vector<8x32xf32>, vector<32x64xf32>, vector<8x64xf32> -> vector<8x64xf32>
    %8 = arith.negf %7 : vector<8x64xf32>
    %9 = math.exp %8 : vector<8x64xf32>
    %cst_7 = arith.constant 1.000000e+00 : f32
    %10 = vector.broadcast %cst_7 : f32 to vector<8x64xf32>
    %11 = arith.addf %10, %9 : vector<8x64xf32>
    %12 = arith.divf %10, %11 : vector<8x64xf32>
    %13 = arith.mulf %7, %12 : vector<8x64xf32>
    %14 = arith.mulf %5, %13 : vector<8x64xf32>
    %c0_8 = arith.constant 0 : index
    %c0_9 = arith.constant 0 : index
    %15 = vector.load %arg7[%c0_8, %c0_9] : memref<8x32xf32, #tpu.memory_space<vmem>>, vector<8x32xf32>
    %c0_10 = arith.constant 0 : index
    %c0_11 = arith.constant 0 : index
    %16 = vector.load %arg5[%c0_10, %c0_11] : memref<64x32xf32, #tpu.memory_space<vmem>>, vector<64x32xf32>
    %cst_12 = arith.constant dense<0.000000e+00> : vector<8x32xf32>
    %17 = tpu.matmul %14, %16, %cst_12 {dimension_numbers = #tpu.dot_dimension_numbers<[1], [0], [0], [1], [0, 0, 1, 1], [], []>} : vector<8x64xf32>, vector<64x32xf32>, vector<8x32xf32> -> vector<8x32xf32>
    %18 = arith.addf %15, %17 : vector<8x32xf32>
    %c0_13 = arith.constant 0 : index
    %c0_14 = arith.constant 0 : index
    %19 = vector.load %arg7[%c0_13, %c0_14] : memref<8x32xf32, #tpu.memory_space<vmem>>, vector<8x32xf32>
    tpu.vector_store %arg7[%c0_13, %c0_14], %18 {strides = array<i32>} : memref<8x32xf32, #tpu.memory_space<vmem>>, vector<8x32xf32>,
    %c0_i32_15 = arith.constant 0 : i32
    %20 = arith.cmpi eq, %arg1, %c0_i32_15 : i32
    %21 = arith.extui %20 : i1 to i32
    %c0_i32_16 = arith.constant 0 : i32
    %22 = arith.cmpi ne, %21, %c0_i32_16 : i32
    scf.if %22 {
      %c0_17 = arith.constant 0 : index
      %c0_18 = arith.constant 0 : index
      %23 = vector.load %arg7[%c0_17, %c0_18] : memref<8x32xf32, #tpu.memory_space<vmem>>, vector<8x32xf32>
      %c0_19 = arith.constant 0 : index
      %c0_20 = arith.constant 0 : index
      %24 = vector.load %arg6[%c0_19, %c0_20] : memref<8x32xf32, #tpu.memory_space<vmem>>, vector<8x32xf32>
      tpu.vector_store %arg6[%c0_19, %c0_20], %23 {strides = array<i32>} : memref<8x32xf32, #tpu.memory_space<vmem>>, vector<8x32xf32>,
    } else {
    }
    return
  }
  func.func @transform_0(%arg0: i32, %arg1: i32) -> (i32, i32) {
    %c0_i32 = arith.constant 0 : i32
    %c0_i32_0 = arith.constant 0 : i32
    return %arg0, %c0_i32 : i32, i32
  }
  func.func @transform_1(%arg0: i32, %arg1: i32) -> (i32, i32) {
    %c0_i32 = arith.constant 0 : i32
    %c0_i32_0 = arith.constant 0 : i32
    return %c0_i32, %arg1 : i32, i32
  }
  func.func @transform_2(%arg0: i32, %arg1: i32) -> (i32, i32) {
    %c0_i32 = arith.constant 0 : i32
    %c0_i32_0 = arith.constant 0 : i32
    return %c0_i32, %arg1 : i32, i32
  }
  func.func @transform_3(%arg0: i32, %arg1: i32) -> (i32, i32) {
    %c0_i32 = arith.constant 0 : i32
    %c0_i32_0 = arith.constant 0 : i32
    return %arg1, %c0_i32 : i32, i32
  }
  func.func @transform_4(%arg0: i32, %arg1: i32) -> (i32, i32) {
    %c0_i32 = arith.constant 0 : i32
    %c0_i32_0 = arith.constant 0 : i32
    return %arg0, %c0_i32 : i32, i32
  }
}

</mosaic_0001>

<bundles_post_ra>
// kernel: tpu_custom_call.1
= control target key start
LH: loop header
LB: loop body
LE: loop exit
PB: predicated region body
PF: predicated region fallthrough
CT: control target
= control target key end

     0   :  { %9 = vsyncpa [#allocation4], 0  ;;  %s1085_s0 = inlined_call_operand.vmem [shape: f32[16,32], index: 0, kind: input, shape index: {}]   ;;  %s1086_s1 = inlined_call_operand.vmem [shape: f32[32,64], index: 1, kind: input, shape index: {}]   ;;  %s1087_s2 = inlined_call_operand.vmem [shape: f32[32,64], index: 2, kind: input, shape index: {}]   ;;  %s1088_s3 = inlined_call_operand.vmem [shape: f32[64,32], index: 3, kind: input, shape index: {}]   ;;  %s1089_s4 = inlined_call_operand.hbm [shape: f32[16,32], index: 4, kind: output, shape index: {}]  }
   0x1   :  { %11 = vsyncpa [#allocation4 + $0x1], 0  ;;  %s917_s15 = smov 0   ;;  %s919_s16 = smov 0  }
   0x2   :  { %s921_s17 = smov 0   ;;  %s923_s18 = smov 0  }
   0x3   :  { %s925_s19 = smov 0   ;;  %s927_s20 = smov 0  }
   0x4 LB: > { %s644_s21 = sadd.s32 4294967295, %s886_s20   ;;  %s645_s22 = sadd.s32 4294967294, %s886_s20   ;;  %s886_s20 = sphi %s927_s20, %s17_s20   ;;  %s882_s19 = sphi %s925_s19, %s1096_s19   ;;  %s878_s18 = sphi %s923_s18, %s1095_s18   ;;  %s874_s17 = sphi %s921_s17, %s1094_s17   ;;  %s870_s16 = sphi %s919_s16, %s1093_s16   ;;  %s866_s15 = sphi %s917_s15, %s1092_s15  }
   0x5   : > { %s29_s23 = sadd.s32 1, %s882_s19  ;;  %s140_s24 = sadd.s32 1, %s874_s17 }
   0x6   : > { %p31_p0 = scmp.ge.s32.totalorder %s29_s23, 2  ;;  %p150_p1 = scmp.ne.s32.totalorder %s874_s17, %s870_s16 }
   0x7   : > { %p151_p2 = scmp.eq.s32.totalorder %s644_s21, 1  ;;  %p156_p3 = scmp.ne.s32.totalorder %s870_s16, %s866_s15 }
   0x8   : > { %s1098_s23 = smov (%p31_p0, %s29_s23), 0  ;;  %p157_p5 = scmp.eq.s32.totalorder %s645_s22, 1 }
   0x9   : > { %p957_p4 = por %p151_p2, %p150_p1  ;;  %s137_s26 = ssub.s32 %s882_s19, %s1098_s23 }
   0xa   : > { %p651_p6 = scmp.ge.s32.totalorder %s886_s20, 1  ;;  %p138_p7 = scmp.eq.s32.totalorder %s137_s26, 0 }
   0xb   : > { %p964_p8 = por %p157_p5, %p156_p3  ;;  %p205_p9 = scmp.lt.s32.totalorder %s886_s20, 3 }
   0xc   : > { %s970_s28 = scalar_select %p138_p7, %s874_s17, %s140_s24  }
   0xd   : > { %p206_p10 = pnand %p651_p6, %p205_p9 }
   0xe   : > { %v268_v0 = vld [vmem:[%s1086_s1] sm:$0xff] (!%p206_p10)  ;;  %v269_v1 = vld [vmem:[%s1086_s1 + $0x8] sm:$0xff] (!%p206_p10)  ;;  %v270_v2 = vld [vmem:[%s1086_s1 + $0x10] sm:$0xff] (!%p206_p10)  ;;  %v888_v3 = vmov (!%p206_p10), 0.0|0.0   ;;  %vm889_vm0 = vmmov (!%p206_p10), 0   ;;  %v890_v6 = vmov (!%p206_p10), 0.0  }
   0xf   : > { %209 = sbr.rel (%p206_p10) target bundleno = 513 (0x201), region = 36  ;;  %722 = vmatprep.subr.bf16.mxu1 (!%p206_p10), %v888_v3  ;;  %v723_v4 = vpack.c.bf16 (!%p206_p10), %v269_v1, %v268_v0  ;;  %v271_v5 = vld [vmem:[%s1086_s1 + $0x18] sm:$0xff] (!%p206_p10)  ;;  %689 = vmatprep.mubr.msk.f32.mxu1 (!%p206_p10), %vm889_vm0, %v890_v6  ;;  %p243_p11 = scmp.lt.s32.totalorder (!%p206_p10), %s878_s18, 1  ;;  %vm265_vm1 = vcmask (!%p206_p10), 261120   ;;  %v346_v8 = vld [vmem:[%s1087_s2] sm:$0xff] (!%p206_p10)  ;;  %v347_v9 = vld [vmem:[%s1087_s2 + $0x8] sm:$0xff] (!%p206_p10) }
  0x10   : > { %266 = vst.msk [vmem:[#allocation2] sm:$0xff] (!%p206_p10), %vm265_vm1, %v890_v6  ;;  %734 = vmatprep.subr.bf16.mxu0 (!%p206_p10), %v888_v3  ;;  %719 = vmatprep.mubr.msk.f32.mxu0 (!%p206_p10), %vm889_vm0, %v890_v6  ;;  %v726_v7 = vpack.c.bf16 (!%p206_p10), %v271_v5, %v270_v2  ;;  %v729_v11 = vpack.c.bf16 (!%p206_p10), %v347_v9, %v346_v8  ;;  %v348_v12 = vld [vmem:[%s1087_s2 + $0x10] sm:$0xff] (!%p206_p10)  ;;  %v349_v13 = vld [vmem:[%s1087_s2 + $0x18] sm:$0xff] (!%p206_p10)  ;;  %v429_v15 = vld [vmem:[%s1088_s3] sm:$0xff] (!%p206_p10)  ;;  %vm437_vm2 = vcmask (!%p206_p10), 523264   ;;  %s240_s8 = sand.u32 (!%p206_p10), 1, %s870_s16  }
  0x11   : > { %724 = vmatpush3.bf16.msra.mxu1 (!%p206_p10), %v723_v4  ;;  %v732_v14 = vpack.c.bf16 (!%p206_p10), %v349_v13, %v348_v12  ;;  %v430_v16 = vld [vmem:[%s1088_s3 + $0x8] sm:$0xff] (!%p206_p10)  ;;  %v431_v18 = vld [vmem:[%s1088_s3 + $0x10] sm:$0xff] (!%p206_p10)  ;;  %v432_v19 = vld [vmem:[%s1088_s3 + $0x18] sm:$0xff] (!%p206_p10)  ;;  %s652_s9 = sshll.u32 (!%p206_p10), %s240_s8, 3  ;;  %s659_s10 = sshll.u32 (!%p206_p10), %s878_s18, 7 }
  0x12   : > { %725 = vmatprep.subr.bf16.mxu1 (!%p206_p10), %v888_v3  ;;  %v735_v17 = vpack.c.bf16 (!%p206_p10), %v430_v16, %v429_v15  ;;  %v738_v20 = vpack.c.bf16 (!%p206_p10), %v432_v19, %v431_v18  ;;  %v433_v21 = vld [vmem:[%s1088_s3 + $0x20] sm:$0xff] (!%p206_p10)  ;;  %v434_v22 = vld [vmem:[%s1088_s3 + $0x28] sm:$0xff] (!%p206_p10)  ;;  %v435_v24 = vld [vmem:[%s1088_s3 + $0x30] sm:$0xff] (!%p206_p10)  ;;  %s1037_s21 = scalar_lea.hbm (!%p206_p10), %s1089_s4, %s659_s10 }
  0x13   : > { %v741_v23 = vpack.c.bf16 (!%p206_p10), %v434_v22, %v433_v21  ;;  %v436_v25 = vld [vmem:[%s1088_s3 + $0x38] sm:$0xff] (!%p206_p10) }
  0x14   : > { %736 = vmatpush3.bf16.msra.mxu0 (!%p206_p10), %v735_v17  ;;  %v744_v26 = vpack.c.bf16 (!%p206_p10), %v436_v25, %v435_v24 }
  0x15   : > { %727 = vmatpush3.bf16.msra.mxu1 (!%p206_p10), %v726_v7  ;;  %737 = vmatprep.subr.bf16.mxu0 (!%p206_p10), %v888_v3 }
  0x16   : > { %s244_s11 = scalar_select %p243_p11, %s878_s18, 1  ;;  %728 = vmatprep.subr.bf16.mxu1 %v888_v3 }
  0x17   : > { %v428_v37 = vld [vmem:[#allocation2] sm:$0xff]  ;;  %s891_s18 = smov [#allocation3]  }
  0x18   : > { %s653_s22 = sshll.u32 %s244_s11, 3  ;;  %739 = vmatpush3.bf16.msra.mxu0 %v738_v20  ;;  %s242_s11 = scalar_lea.vmem [#allocation3], %s652_s9 }
  0x19   : > { %s246_s29 = scalar_lea.vmem %s1085_s0, %s653_s22  ;;  %740 = vmatprep.subr.bf16.mxu0 %v888_v3  ;;  %s532_s12 = sshll.u32 %s242_s11, 4  ;;  %s1039_s12 = int_to_ptr.vmem [resolvable:$true] %s532_s12 }
  0x1a   : > { %v267_v10 = vld [vmem:[%s246_s29] sm:$0xff]  ;;  %s519_s22 = scalar_lea.sflag [#allocation4], %s240_s8  ;;  %s808_s24 = scalar_lea.vmem %s1039_s12, 128 }
  0x1b   : > { %690 = vmatmul.mubr.msk.f32.vlgmr.msra.gmra.mrb[0].mxu1 %vm265_vm1, %v267_v10  ;;  %p809_p12 = scmp.ne.s32.totalorder %s1039_s12, %s808_s24  ;;  %s812_s26 = sshll.u32 %s891_s18, 4  ;;  %s813_s26 = int_to_ptr.vmem [resolvable:$false] %s812_s26 }
  0x1c   : > { %730 = vmatpush3.bf16.msra.mxu1 %v729_v11  ;;  %700 = vmatprep.mubr.msk.f32.mxu1 %vm889_vm0, %v890_v6  ;;  %s814_s29 = scalar_lea.vmem %s813_s26, 256  ;;  %p815_p1 = scmp.lt.s32.totalorder %s1039_s12, %s813_s26 }
  0x1d   : > { %731 = vmatprep.subr.bf16.mxu1 %v888_v3  ;;  %742 = vmatpush3.bf16.msra.mxu0 %v741_v23  ;;  %p810_p13 = pnand %p809_p12, %p957_p4  ;;  %p816_p2 = scmp.lt.s32.totalorder %s814_s29, %s808_s24 }
  0x1e   : > { %743 = vmatprep.subr.bf16.mxu0 %v888_v3 }
  0x1f   : > { %p811_p0 = pneg %p810_p13  ;;  %p817_p3 = por %p816_p2, %p815_p1 }
  0x20   : > { %733 = vmatpush3.bf16.msra.mxu1 %v732_v14 }
  0x21   : > { %745 = vmatpush3.bf16.msra.mxu0 %v744_v26  ;;  %p818_p5 = pnand %p817_p3, %p811_p0 }
  0x23   : > { %701 = vmatmul.mubr.msk.f32.vlgmr.msra.gmra.mrb[2].mxu1 %vm265_vm1, %v267_v10 }
  0xee   : > { %v342_v27 = vpop.f32.mrb[0].mxu1 }
  0xef   : > { %v691_v28 = vpop.f32.mrb[1].mxu1 }
  0xf6   : > { %v416_v29 = vpop.f32.mrb[2].mxu1 }
  0xf7   : > { %v656_v30 = vmul.f32 -1.442695, %v416_v29  ;;  %v702_v31 = vpop.f32.mrb[3].mxu1 }
  0xf9   : > { %804 = vpow2.f32 %v656_v30 }
 0x103   : > { %v805_v32 = vpop.eup %804 }
 0x104   : > { %v423_v33 = vadd.f32 1.0, %v805_v32 }
 0x106   : > { %806 = vrcp.f32 %v423_v33 }
 0x110   : > { %v807_v34 = vpop.eup %806 }
 0x111   : > { %v426_v35 = vmul.f32 %v807_v34, %v416_v29 }
 0x113   : > { %v427_v36 = vmul.f32 %v426_v35, %v342_v27 }
 0x115   : > { %720 = vmatmul.mubr.msk.f32.vlgmr.msra.gmra.mrb[0].mxu0 %vm437_vm2, %v427_v36 }
 0x1e8   : > { %v507_v38 = vpop.f32.mrb[0].mxu0 }
 0x1e9   : > { %v511_v39 = vadd.f32 %v507_v38, %v428_v37  ;;  %v721_v40 = vpop.f32.mrb[1].mxu0 }
 0x1eb   : > { %512 = vst.msk [vmem:[#allocation2] sm:$0xff] %vm265_vm1, %v511_v39 }
 0x1f2   : > { %v516_v41 = vld [vmem:[#allocation2] sm:$0xff] }
 0x1f3   : > { %517 = vst.msk [vmem:[%s242_s11] sm:$0xff] %vm265_vm1, %v516_v41 }
 0x1f4   : > { %821 = shalt.err (!%p818_p5)
}
 0x1f5   : > { %s822_s30 = scalar_lea.hbm %s1037_s21, 128  ;;  %s826_s7 = scalar_lea.hbm %s1089_s4, 256 }
 0x1f6   : > { %p823_p6 = scmp.ne.s32.totalorder %s1037_s21, %s822_s30  ;;  %p827_p10 = scmp.lt.u32.totalorder %s1037_s21, %s1089_s4 }
 0x1f7   : > { %p828_p11 = scmp.lt.u32.totalorder %s826_s7, %s822_s30  ;;  %p830_p13 = scmp.lt.u32.totalorder %s822_s30, %s1037_s21 }
 0x1f8   : > { %p824_p7 = pnand %p823_p6, %p957_p4 }
 0x1f9   : > { %p829_p12 = por %p828_p11, %p827_p10 }
 0x1fa   : > { %p825_p9 = pneg %p824_p7 }
 0x1fb   : > { %p831_p0 = por %p830_p13, %p829_p12 }
 0x1fd   : > { %p832_p1 = pnand %p831_p0, %p825_p9 }
 0x1ff   : > { %835 = shalt.err (!%p832_p1)
}
 0x200   : > { %746 = dma.vmem_to_hbm [thread:$0]  (%p957_p4), %s1039_s12, 128, %s1037_s21, %s519_s22  }
 0x201 PF: > { %p752_p2 = scmp.ge.s32.totalorder %s886_s20, 2  ;;  %s544_s10 = sand.u32 1, %s866_s15  }
 0x202   : > { %s545_s11 = scalar_lea.sflag [#allocation4], %s544_s10 }
 0x203   : > { %p749_p3 = pnand %p752_p2, %p964_p8 }
 0x205   : > { %861 = dma.done.wait (!%p749_p3), %s545_s11, 128  }
 0x206   : > { %863 = vsyncadd (!%p749_p3), %s545_s11, 4294967168  ;;  %s17_s20 = sadd.s32 1, %s886_s20   ;;  %s1092_s15 = smov %s870_s16 }
 0x207   : > { %p14_p5 = scmp.ge.s32.totalorder %s17_s20, 4   ;;  %s1093_s16 = smov %s874_s17 }
 0x208   : > { %s1094_s17 = smov %s970_s28  ;;  %s1095_s18 = smov %s882_s19 }
 0x209   : > { %s1096_s19 = smov %s1098_s23  ;;  %16 = sbr.rel (!%p14_p5) target bundleno = 4 (0x4), region = 88 }
 0x210   :  { %550 = vsyncpa [#allocation4], 1 }
 0x211   :  { %552 = vsyncpa [#allocation4 + $0x1], 1 }

</bundles_post_ra>
